<compile_context>
chip_gen: v7x
topology: tpu7x:2x2x1
jax: 0.10.0
libtpu: 0.0.40
codegen_flags: <defaults>
</compile_context>

<pallas_src>
import jax
import jax.numpy as jnp
from jax.experimental import pallas as pl
from jax.experimental.pallas import tpu as pltpu


def _round_up(x, m):
    return (x + m - 1) // m * m


def _make_mlp_kernel(layer_out_dims):
    """Build a fused MLP kernel body for the given (lane-padded) layer widths."""
    n_layers = len(layer_out_dims)
    offsets = []
    off = 0
    for n in layer_out_dims:
        offsets.append(off)
        off += n

    def kernel(x_ref, *refs):
        w_refs = refs[:n_layers]            # each (K_i, N_i) bf16, VMEM-resident
        b_ref = refs[n_layers]              # (1, sum_N) f32, all biases concatenated
        o_ref = refs[n_layers + 1]          # (tb, N_last) output tile
        h = x_ref[...]                      # (tb, K0) f32 activations
        for i, n in enumerate(layer_out_dims):
            b = b_ref[:, offsets[i]:offsets[i] + n]              # (1, n) f32
            y = jnp.dot(h.astype(jnp.bfloat16), w_refs[i][...],
                        preferred_element_type=jnp.float32)      # MXU, f32 acc
            h = jnp.maximum(y + b, 0.0)                          # bias+ReLU in f32
        o_ref[...] = h.astype(o_ref.dtype)

    return kernel


def init_fighter_net_params(key, input_size, network_shape=(128, 256, 512, 256, 127)):
    """Deterministic init mirroring nn.Linear's default U(-1/sqrt(in), 1/sqrt(in)).

    Weights are stored as (in_features, out_features) so each layer is
    y = relu(x @ W + b) (the transpose of PyTorch's (out, in) layout).
    """
    shape = [input_size] + list(network_shape)
    params = []
    for fan_in, fan_out in zip(shape[:-1], shape[1:]):
        key, kw, kb = jax.random.split(key, 3)
        bound = 1.0 / jnp.sqrt(jnp.float32(fan_in))
        w = jax.random.uniform(kw, (fan_in, fan_out), jnp.float32, -bound, bound)
        b = jax.random.uniform(kb, (fan_out,), jnp.float32, -bound, bound)
        params.append((w, b))
    return params


def fighter_net_forward(params, x, dropout_prob=0.0, tb_max=256):
    """Forward pass: for each layer, x = dropout(relu(fc(x))), fused in one kernel.

    dropout_prob == 0.0  =>  dropout is identity (matches the PyTorch default).
    """
    del dropout_prob  # identity at p=0.0
    B, K0 = x.shape
    n_layers = len(params)

    # --- prep: lane-pad layer widths (127 -> 128), cast weights to bf16 -----
    ws, bs, out_dims = [], [], []
    prev_pad = K0
    for w, b in params:
        k, n = w.shape
        n_pad = _round_up(n, 128)
        w_p = jnp.pad(w, ((0, prev_pad - k), (0, n_pad - n)))
        b_p = jnp.pad(b, (0, n_pad - n))
        ws.append(w_p.astype(jnp.bfloat16))
        bs.append(b_p.astype(jnp.float32))
        out_dims.append(n_pad)
        prev_pad = n_pad
    b_all = jnp.concatenate(bs).reshape(1, -1)
    total_b = b_all.shape[1]
    n_out = out_dims[-1]

    # --- batch tiling: tb up to 256, batch padded to a tile multiple --------
    tb = min(tb_max, _round_up(B, 8))
    B_pad = _round_up(B, tb)
    x_pad = x if B_pad == B else jnp.pad(x, ((0, B_pad - B), (0, 0)))

    kernel = _make_mlp_kernel(tuple(out_dims))

    flops = int(2 * B_pad * sum(int(w.shape[0]) * int(w.shape[1]) for w in ws))
    bytes_accessed = int(
        x_pad.size * x_pad.dtype.itemsize
        + sum(int(w.size) * 2 for w in ws)       # bf16 weights
        + total_b * 4                            # f32 biases
        + B_pad * n_out * x.dtype.itemsize       # output
    )

    in_specs = [pl.BlockSpec((tb, K0), lambda i: (i, 0))]
    for w in ws:
        in_specs.append(pl.BlockSpec(w.shape, lambda i: (0, 0)))   # VMEM-resident
    in_specs.append(pl.BlockSpec((1, total_b), lambda i: (0, 0)))

    out = pl.pallas_call(
        kernel,
        out_shape=jax.ShapeDtypeStruct((B_pad, n_out), x.dtype),
        grid=(B_pad // tb,),
        in_specs=in_specs,
        out_specs=pl.BlockSpec((tb, n_out), lambda i: (i, 0)),
        compiler_params=pltpu.CompilerParams(
            dimension_semantics=("parallel",)),
        cost_estimate=pl.CostEstimate(
            flops=flops, transcendentals=0, bytes_accessed=bytes_accessed),
    )(x_pad, *ws, b_all)

    n_last = params[-1][0].shape[1]
    return out[:B, :n_last]


def fighter_net_reference_bf16(params, x):
    """Plain-JAX reference matching the kernel's arithmetic exactly
    (bf16 matmul inputs, f32 accumulation, f32 bias+ReLU)."""
    h = x
    for w, b in params:
        y = jnp.dot(h.astype(jnp.bfloat16), w.astype(jnp.bfloat16),
                    preferred_element_type=jnp.float32)
        h = jnp.maximum(y + b, 0.0)
    return h


def fighter_net_reference_f32(params, x):
    """Full-f32 reference (semantic sanity check)."""
    h = x
    for w, b in params:
        h = jnp.maximum(h @ w + b, 0.0)
    return h


if __name__ == "__main__":
    key = jax.random.PRNGKey(0)
    key, kx = jax.random.split(key)

    batch = 2
    input_size = 16
    network_shape = (128, 256, 512, 256, 127)

    params = init_fighter_net_params(key, input_size, network_shape)
    x = jax.random.normal(kx, (batch, input_size), jnp.float32)

    out = fighter_net_forward(params, x)
    out = jax.block_until_ready(out)
    assert out.shape == (batch, network_shape[-1]), out.shape

    # Tight check vs a reference with identical bf16-weight arithmetic.
    ref = fighter_net_reference_bf16(params, x)
    assert jnp.allclose(out, ref, atol=1e-3, rtol=1e-3), "mismatch vs bf16 reference"

    # Loose sanity check vs the full-f32 reference (bf16 weight quantization
    # introduces ~1% relative error over 5 layers).
    ref32 = fighter_net_reference_f32(params, x)
    assert jnp.allclose(out, ref32, atol=0.2, rtol=0.2), "mismatch vs f32 reference"

    print("KERNEL_OK")
</pallas_src>

<mosaic_0001>
module attributes {stable_mosaic.version = 11 : i64} {
  func.func @kernel(%arg0: i32, %arg1: memref<8x16xf32, #tpu.memory_space<vmem>>, %arg2: memref<16x128xbf16, #tpu.memory_space<vmem>>, %arg3: memref<128x256xbf16, #tpu.memory_space<vmem>>, %arg4: memref<256x512xbf16, #tpu.memory_space<vmem>>, %arg5: memref<512x256xbf16, #tpu.memory_space<vmem>>, %arg6: memref<256x128xbf16, #tpu.memory_space<vmem>>, %arg7: memref<1x1280xf32, #tpu.memory_space<vmem>>, %arg8: memref<8x128xf32, #tpu.memory_space<vmem>>) attributes {dimension_semantics = [#tpu.dimension_semantics<parallel>], iteration_bounds = array<i64: 1>, scalar_prefetch = 0 : i64, scratch_operands = 0 : i64, tpu.core_type = #tpu.core_type<tc>, window_params = [{transform_indices = @transform_0, window_bounds = array<i64: 8, 16>}, {pipeline_mode = #tpu.pipeline_mode<synchronous>, transform_indices = @transform_1, window_bounds = array<i64: 16, 128>}, {pipeline_mode = #tpu.pipeline_mode<synchronous>, transform_indices = @transform_2, window_bounds = array<i64: 128, 256>}, {pipeline_mode = #tpu.pipeline_mode<synchronous>, transform_indices = @transform_3, window_bounds = array<i64: 256, 512>}, {pipeline_mode = #tpu.pipeline_mode<synchronous>, transform_indices = @transform_4, window_bounds = array<i64: 512, 256>}, {pipeline_mode = #tpu.pipeline_mode<synchronous>, transform_indices = @transform_5, window_bounds = array<i64: 256, 128>}, {pipeline_mode = #tpu.pipeline_mode<synchronous>, transform_indices = @transform_6, window_bounds = array<i64: 1, 1280>}, {transform_indices = @transform_7, window_bounds = array<i64: 8, 128>}]} {
    %c0 = arith.constant 0 : index
    %c0_0 = arith.constant 0 : index
    %0 = vector.load %arg1[%c0, %c0_0] : memref<8x16xf32, #tpu.memory_space<vmem>>, vector<8x16xf32>
    %c0_1 = arith.constant 0 : index
    %c0_2 = arith.constant 0 : index
    %1 = vector.load %arg7[%c0_1, %c0_2] : memref<1x1280xf32, #tpu.memory_space<vmem>>, vector<1x128xf32>
    %2 = arith.truncf %0 : vector<8x16xf32> to vector<8x16xbf16>
    %c0_3 = arith.constant 0 : index
    %c0_4 = arith.constant 0 : index
    %3 = vector.load %arg2[%c0_3, %c0_4] : memref<16x128xbf16, #tpu.memory_space<vmem>>, vector<16x128xbf16>
    %cst = arith.constant dense<0.000000e+00> : vector<8x128xf32>
    %4 = tpu.matmul %2, %3, %cst {dimension_numbers = #tpu.dot_dimension_numbers<[1], [0], [0], [1], [0, 0, 1, 1], [], []>} : vector<8x16xbf16>, vector<16x128xbf16>, vector<8x128xf32> -> vector<8x128xf32>
    %5 = vector.broadcast %1 : vector<1x128xf32> to vector<8x128xf32>
    %6 = arith.addf %4, %5 : vector<8x128xf32>
    %cst_5 = arith.constant 0.000000e+00 : f32
    %7 = vector.broadcast %cst_5 : f32 to vector<8x128xf32>
    %8 = arith.maximumf %6, %7 : vector<8x128xf32>
    %c0_6 = arith.constant 0 : index
    %c128 = arith.constant 128 : index
    %9 = vector.load %arg7[%c0_6, %c128] : memref<1x1280xf32, #tpu.memory_space<vmem>>, vector<1x256xf32>
    %10 = arith.truncf %8 : vector<8x128xf32> to vector<8x128xbf16>
    %c0_7 = arith.constant 0 : index
    %c0_8 = arith.constant 0 : index
    %11 = vector.load %arg3[%c0_7, %c0_8] : memref<128x256xbf16, #tpu.memory_space<vmem>>, vector<128x256xbf16>
    %cst_9 = arith.constant dense<0.000000e+00> : vector<8x256xf32>
    %12 = tpu.matmul %10, %11, %cst_9 {dimension_numbers = #tpu.dot_dimension_numbers<[1], [0], [0], [1], [0, 0, 1, 1], [], []>} : vector<8x128xbf16>, vector<128x256xbf16>, vector<8x256xf32> -> vector<8x256xf32>
    %13 = vector.broadcast %9 : vector<1x256xf32> to vector<8x256xf32>
    %14 = arith.addf %12, %13 : vector<8x256xf32>
    %cst_10 = arith.constant 0.000000e+00 : f32
    %15 = vector.broadcast %cst_10 : f32 to vector<8x256xf32>
    %16 = arith.maximumf %14, %15 : vector<8x256xf32>
    %c0_11 = arith.constant 0 : index
    %c384 = arith.constant 384 : index
    %17 = vector.load %arg7[%c0_11, %c384] : memref<1x1280xf32, #tpu.memory_space<vmem>>, vector<1x512xf32>
    %18 = arith.truncf %16 : vector<8x256xf32> to vector<8x256xbf16>
    %c0_12 = arith.constant 0 : index
    %c0_13 = arith.constant 0 : index
    %19 = vector.load %arg4[%c0_12, %c0_13] : memref<256x512xbf16, #tpu.memory_space<vmem>>, vector<256x512xbf16>
    %cst_14 = arith.constant dense<0.000000e+00> : vector<8x512xf32>
    %20 = tpu.matmul %18, %19, %cst_14 {dimension_numbers = #tpu.dot_dimension_numbers<[1], [0], [0], [1], [0, 0, 1, 1], [], []>} : vector<8x256xbf16>, vector<256x512xbf16>, vector<8x512xf32> -> vector<8x512xf32>
    %21 = vector.broadcast %17 : vector<1x512xf32> to vector<8x512xf32>
    %22 = arith.addf %20, %21 : vector<8x512xf32>
    %cst_15 = arith.constant 0.000000e+00 : f32
    %23 = vector.broadcast %cst_15 : f32 to vector<8x512xf32>
    %24 = arith.maximumf %22, %23 : vector<8x512xf32>
    %c0_16 = arith.constant 0 : index
    %c896 = arith.constant 896 : index
    %25 = vector.load %arg7[%c0_16, %c896] : memref<1x1280xf32, #tpu.memory_space<vmem>>, vector<1x256xf32>
    %26 = arith.truncf %24 : vector<8x512xf32> to vector<8x512xbf16>
    %c0_17 = arith.constant 0 : index
    %c0_18 = arith.constant 0 : index
    %27 = vector.load %arg5[%c0_17, %c0_18] : memref<512x256xbf16, #tpu.memory_space<vmem>>, vector<512x256xbf16>
    %cst_19 = arith.constant dense<0.000000e+00> : vector<8x256xf32>
    %28 = tpu.matmul %26, %27, %cst_19 {dimension_numbers = #tpu.dot_dimension_numbers<[1], [0], [0], [1], [0, 0, 1, 1], [], []>} : vector<8x512xbf16>, vector<512x256xbf16>, vector<8x256xf32> -> vector<8x256xf32>
    %29 = vector.broadcast %25 : vector<1x256xf32> to vector<8x256xf32>
    %30 = arith.addf %28, %29 : vector<8x256xf32>
    %cst_20 = arith.constant 0.000000e+00 : f32
    %31 = vector.broadcast %cst_20 : f32 to vector<8x256xf32>
    %32 = arith.maximumf %30, %31 : vector<8x256xf32>
    %c0_21 = arith.constant 0 : index
    %c1152 = arith.constant 1152 : index
    %33 = vector.load %arg7[%c0_21, %c1152] : memref<1x1280xf32, #tpu.memory_space<vmem>>, vector<1x128xf32>
    %34 = arith.truncf %32 : vector<8x256xf32> to vector<8x256xbf16>
    %c0_22 = arith.constant 0 : index
    %c0_23 = arith.constant 0 : index
    %35 = vector.load %arg6[%c0_22, %c0_23] : memref<256x128xbf16, #tpu.memory_space<vmem>>, vector<256x128xbf16>
    %cst_24 = arith.constant dense<0.000000e+00> : vector<8x128xf32>
    %36 = tpu.matmul %34, %35, %cst_24 {dimension_numbers = #tpu.dot_dimension_numbers<[1], [0], [0], [1], [0, 0, 1, 1], [], []>} : vector<8x256xbf16>, vector<256x128xbf16>, vector<8x128xf32> -> vector<8x128xf32>
    %37 = vector.broadcast %33 : vector<1x128xf32> to vector<8x128xf32>
    %38 = arith.addf %36, %37 : vector<8x128xf32>
    %cst_25 = arith.constant 0.000000e+00 : f32
    %39 = vector.broadcast %cst_25 : f32 to vector<8x128xf32>
    %40 = arith.maximumf %38, %39 : vector<8x128xf32>
    %c0_26 = arith.constant 0 : index
    %c0_27 = arith.constant 0 : index
    %41 = vector.load %arg8[%c0_26, %c0_27] : memref<8x128xf32, #tpu.memory_space<vmem>>, vector<8x128xf32>
    tpu.vector_store %arg8[%c0_26, %c0_27], %40 {strides = array<i32>} : memref<8x128xf32, #tpu.memory_space<vmem>>, vector<8x128xf32>,
    return
  }
  func.func @transform_0(%arg0: i32) -> (i32, i32) {
    %c0_i32 = arith.constant 0 : i32
    %c0_i32_0 = arith.constant 0 : i32
    return %arg0, %c0_i32 : i32, i32
  }
  func.func @transform_1(%arg0: i32) -> (i32, i32) {
    %c0_i32 = arith.constant 0 : i32
    %c0_i32_0 = arith.constant 0 : i32
    %c0_i32_1 = arith.constant 0 : i32
    return %c0_i32, %c0_i32_0 : i32, i32
  }
  func.func @transform_2(%arg0: i32) -> (i32, i32) {
    %c0_i32 = arith.constant 0 : i32
    %c0_i32_0 = arith.constant 0 : i32
    %c0_i32_1 = arith.constant 0 : i32
    return %c0_i32, %c0_i32_0 : i32, i32
  }
  func.func @transform_3(%arg0: i32) -> (i32, i32) {
    %c0_i32 = arith.constant 0 : i32
    %c0_i32_0 = arith.constant 0 : i32
    %c0_i32_1 = arith.constant 0 : i32
    return %c0_i32, %c0_i32_0 : i32, i32
  }
  func.func @transform_4(%arg0: i32) -> (i32, i32) {
    %c0_i32 = arith.constant 0 : i32
    %c0_i32_0 = arith.constant 0 : i32
    %c0_i32_1 = arith.constant 0 : i32
    return %c0_i32, %c0_i32_0 : i32, i32
  }
  func.func @transform_5(%arg0: i32) -> (i32, i32) {
    %c0_i32 = arith.constant 0 : i32
    %c0_i32_0 = arith.constant 0 : i32
    %c0_i32_1 = arith.constant 0 : i32
    return %c0_i32, %c0_i32_0 : i32, i32
  }
  func.func @transform_6(%arg0: i32) -> (i32, i32) {
    %c0_i32 = arith.constant 0 : i32
    %c0_i32_0 = arith.constant 0 : i32
    %c0_i32_1 = arith.constant 0 : i32
    return %c0_i32, %c0_i32_0 : i32, i32
  }
  func.func @transform_7(%arg0: i32) -> (i32, i32) {
    %c0_i32 = arith.constant 0 : i32
    %c0_i32_0 = arith.constant 0 : i32
    return %arg0, %c0_i32 : i32, i32
  }
}

</mosaic_0001>

<bundles_post_ra>
// kernel: tpu_custom_call.1
= control target key start
LH: loop header
LB: loop body
LE: loop exit
PB: predicated region body
PF: predicated region fallthrough
CT: control target
= control target key end

     0   :  { %12 = vsyncpa [#allocation3], 0  ;;  %s2310_s0 = inlined_call_operand.hbm [shape: f32[8,16], index: 0, kind: input, shape index: {}]   ;;  %s2311_s1 = inlined_call_operand.hbm [shape: bf16[16,128], index: 1, kind: input, shape index: {}]   ;;  %s2312_s2 = inlined_call_operand.hbm [shape: bf16[128,256], index: 2, kind: input, shape index: {}]   ;;  %s2313_s3 = inlined_call_operand.hbm [shape: bf16[256,512], index: 3, kind: input, shape index: {}]   ;;  %s2314_s4 = inlined_call_operand.hbm [shape: bf16[512,256], index: 4, kind: input, shape index: {}]   ;;  %s2315_s5 = inlined_call_operand.hbm [shape: bf16[256,128], index: 5, kind: input, shape index: {}]   ;;  %s2316_s6 = inlined_call_operand.vmem [shape: f32[1,1280], index: 6, kind: input, shape index: {}]   ;;  %s2317_s7 = inlined_call_operand.hbm [shape: f32[8,128], index: 7, kind: output, shape index: {}]  }
   0x1   :  { %13 = vsyncpa [#allocation6], 0 }
   0x2   :  { %14 = vsyncpa [#allocation9], 0 }
   0x3   :  { %15 = vsyncpa [#allocation12], 0 }
   0x4   :  { %16 = vsyncpa [#allocation4], 0  ;;  %s2110_s24 = smov [#allocation5]   ;;  %s1946_s28 = scalar_lea.hbm %s2311_s1, 128 }
   0x5   :  { %s32_s25 = sshll.u32 %s2110_s24, 4  ;;  %p1947_p0 = scmp.ne.s32.totalorder %s2311_s1, %s1946_s28  ;;  %s33_s25 = int_to_ptr.vmem [resolvable:$true] %s32_s25 }
   0x6   :  { %p1950_p1 = scmp.lt.u32.totalorder %s1946_s28, %s2311_s1 }
   0x8   :  { %p1952_p2 = pnand %p1950_p1, %p1947_p0 }
   0xa   :  { %1955 = shalt.err (!%p1952_p2)
}
   0xb   :  { %s1956_s10 = scalar_lea.vmem %s33_s25, 128  ;;  %p1961_p4 = scmp.lt.s32.totalorder %s33_s25, %s33_s25 }
   0xc   :  { %p1957_p3 = scmp.ne.s32.totalorder %s33_s25, %s1956_s10  ;;  %p1962_p5 = scmp.lt.s32.totalorder %s1956_s10, %s1956_s10 }
   0xe   :  { %p1963_p6 = por %p1962_p5, %p1961_p4 }
  0x10   :  { %p1964_p7 = pnand %p1963_p6, %p1957_p3 }
  0x12   :  { %1967 = shalt.err (!%p1964_p7)
}
  0x13   :  { %s2111_s11 = smov 64   ;;  %s2112_s12 = smov 4  }
  0x14   :  { %38 = dma.hbm_to_vmem [thread:$0]  %s2311_s1, 128, %s33_s25, [#allocation6], %s2111_s11, %s2111_s11, %s2112_s12  }
  0x15   :  { %s2113_s15 = smov [#allocation8]   ;;  %s1968_s19 = scalar_lea.hbm %s2313_s3, 8192 }
  0x16   :  { %s56_s16 = sshll.u32 %s2113_s15, 4  ;;  %p1969_p8 = scmp.ne.s32.totalorder %s2313_s3, %s1968_s19  ;;  %s57_s16 = int_to_ptr.vmem [resolvable:$true] %s56_s16 }
  0x17   :  { %p1972_p9 = scmp.lt.u32.totalorder %s1968_s19, %s2313_s3 }
  0x19   :  { %p1974_p10 = pnand %p1972_p9, %p1969_p8 }
  0x1b   :  { %1977 = shalt.err (!%p1974_p10)
}
  0x1c   :  { %s1978_s24 = scalar_lea.vmem %s57_s16, 8192  ;;  %p1983_p12 = scmp.lt.s32.totalorder %s57_s16, %s57_s16 }
  0x1d   :  { %p1979_p11 = scmp.ne.s32.totalorder %s57_s16, %s1978_s24  ;;  %p1984_p13 = scmp.lt.s32.totalorder %s1978_s24, %s1978_s24 }
  0x1f   :  { %p1985_p0 = por %p1984_p13, %p1983_p12 }
  0x21   :  { %p1986_p1 = pnand %p1985_p0, %p1979_p11 }
  0x23   :  { %1989 = shalt.err (!%p1986_p1)
}
  0x24   :  { %s2114_s1 = smov 256   ;;  %s2115_s25 = smov 16  }
  0x25   :  { %62 = dma.hbm_to_vmem [thread:$0]  %s2313_s3, 8192, %s57_s16, [#allocation9], %s2114_s1, %s2114_s1, %s2115_s25  }
  0x26   :  { %s2116_s28 = smov [#allocation2]   ;;  %s2117_s30 = smov [#allocation7]  }
  0x27   :  { %s23_s29 = sshll.u32 %s2116_s28, 4  ;;  %s44_s8 = sshll.u32 %s2117_s30, 4  ;;  %s24_s29 = int_to_ptr.vmem [resolvable:$true] %s23_s29  ;;  %s2193_s8 = int_to_ptr.vmem [resolvable:$true] %s44_s8 }
  0x28   :  { %s1990_s13 = scalar_lea.hbm %s2310_s0, 128 }
  0x29   :  { %p1991_p2 = scmp.ne.s32.totalorder %s2310_s0, %s1990_s13  ;;  %p1994_p3 = scmp.lt.u32.totalorder %s1990_s13, %s2310_s0 }
  0x2b   :  { %p1996_p4 = pnand %p1994_p3, %p1991_p2 }
  0x2d   :  { %1999 = shalt.err (!%p1996_p4)
}
  0x2e   :  { %s2000_s3 = scalar_lea.vmem %s24_s29, 128  ;;  %p2005_p6 = scmp.lt.s32.totalorder %s24_s29, %s24_s29 }
  0x2f   :  { %p2001_p5 = scmp.ne.s32.totalorder %s24_s29, %s2000_s3  ;;  %p2006_p7 = scmp.lt.s32.totalorder %s2000_s3, %s2000_s3 }
  0x31   :  { %p2007_p8 = por %p2006_p7, %p2005_p6 }
  0x33   :  { %p2008_p9 = pnand %p2007_p8, %p2001_p5 }
  0x35   :  { %2011 = shalt.err (!%p2008_p9)
}
  0x36   :  { %26 = dma.hbm_to_vmem [thread:$0]  %s2310_s0, 128, %s24_s29, [#allocation3]  }
  0x37   :  { %s2012_s22 = scalar_lea.hbm %s2312_s2, 2048 }
  0x38   :  { %p2013_p10 = scmp.ne.s32.totalorder %s2312_s2, %s2012_s22  ;;  %p2016_p11 = scmp.lt.u32.totalorder %s2012_s22, %s2312_s2 }
  0x3a   :  { %p2018_p12 = pnand %p2016_p11, %p2013_p10 }
  0x3c   :  { %2021 = shalt.err (!%p2018_p12)
}
  0x3d   :  { %s2022_s26 = scalar_lea.vmem %s2193_s8, 2048  ;;  %p2027_p0 = scmp.lt.s32.totalorder %s2193_s8, %s2193_s8 }
  0x3e   :  { %p2023_p13 = scmp.ne.s32.totalorder %s2193_s8, %s2022_s26  ;;  %p2028_p1 = scmp.lt.s32.totalorder %s2022_s26, %s2022_s26 }
  0x40   :  { %p2029_p2 = por %p2028_p1, %p2027_p0 }
  0x42   :  { %p2030_p3 = pnand %p2029_p2, %p2023_p13 }
  0x44   :  { %2033 = shalt.err (!%p2030_p3)
}
  0x45   :  { %s2118_s0 = smov 128   ;;  %s2119_s27 = smov 8  }
  0x46   :  { %50 = dma.hbm_to_vmem [thread:$0]  %s2312_s2, 2048, %s2193_s8, [#allocation6], %s2118_s0, %s2118_s0, %s2119_s27  }
  0x47   :  { %s2120_s30 = smov [#allocation10]   ;;  %s2121_s10 = smov [#allocation11]  }
  0x48   :  { %s68_s9 = sshll.u32 %s2120_s30, 4  ;;  %s80_s13 = sshll.u32 %s2121_s10, 4  ;;  %s69_s9 = int_to_ptr.vmem [resolvable:$true] %s68_s9  ;;  %s2224_s13 = int_to_ptr.vmem [resolvable:$true] %s80_s13 }
  0x49   :  { %s2034_s17 = scalar_lea.hbm %s2314_s4, 8192 }
  0x4a   :  { %p2035_p4 = scmp.ne.s32.totalorder %s2314_s4, %s2034_s17  ;;  %p2038_p5 = scmp.lt.u32.totalorder %s2034_s17, %s2314_s4 }
  0x4c   :  { %p2040_p6 = pnand %p2038_p5, %p2035_p4 }
  0x4e   :  { %2043 = shalt.err (!%p2040_p6)
}
  0x4f   :  { %s2044_s2 = scalar_lea.vmem %s69_s9, 8192  ;;  %p2049_p8 = scmp.lt.s32.totalorder %s69_s9, %s69_s9 }
  0x50   :  { %p2045_p7 = scmp.ne.s32.totalorder %s69_s9, %s2044_s2  ;;  %p2050_p9 = scmp.lt.s32.totalorder %s2044_s2, %s2044_s2 }
  0x52   :  { %p2051_p10 = por %p2050_p9, %p2049_p8 }
  0x54   :  { %p2052_p11 = pnand %p2051_p10, %p2045_p7 }
  0x56   :  { %2055 = shalt.err (!%p2052_p11)
}
  0x57   :  { %74 = dma.hbm_to_vmem [thread:$0]  %s2314_s4, 8192, %s69_s9, [#allocation9], %s2118_s0, %s2118_s0, %s2119_s27  }
  0x58   :  { %s2056_s23 = scalar_lea.hbm %s2315_s5, 2048 }
  0x59   :  { %p2057_p12 = scmp.ne.s32.totalorder %s2315_s5, %s2056_s23  ;;  %p2060_p13 = scmp.lt.u32.totalorder %s2056_s23, %s2315_s5 }
  0x5b   :  { %p2062_p0 = pnand %p2060_p13, %p2057_p12 }
  0x5d   :  { %2065 = shalt.err (!%p2062_p0)
}
  0x5e   :  { %s2066_s28 = scalar_lea.vmem %s2224_s13, 2048  ;;  %p2071_p2 = scmp.lt.s32.totalorder %s2224_s13, %s2224_s13 }
  0x5f   :  { %p2067_p1 = scmp.ne.s32.totalorder %s2224_s13, %s2066_s28  ;;  %p2072_p3 = scmp.lt.s32.totalorder %s2066_s28, %s2066_s28 }
  0x61   :  { %p2073_p4 = por %p2072_p3, %p2071_p2 }
  0x63   :  { %p2074_p5 = pnand %p2073_p4, %p2067_p1 }
  0x65   :  { %2077 = shalt.err (!%p2074_p5)
}
  0x66   :  { %86 = dma.hbm_to_vmem [thread:$0]  %s2315_s5, 2048, %s2224_s13, [#allocation12], %s2111_s11, %s2111_s11, %s2112_s12  }
  0x67   :  { %2100 = dma.done.wait [#allocation3], 128  }
  0x68   :  { %2101 = vsyncadd [#allocation3], 4294967168 }
  0x69   :  { %2102 = dma.done.wait [#allocation6], 2176  }
  0x6a   :  { %2103 = vsyncadd [#allocation6], 4294965120 }
  0x6b   :  { %2104 = dma.done.wait [#allocation9], 16384  }
  0x6c   :  { %2105 = vsyncadd [#allocation9], 4294950912 }
  0x6d   :  { %2106 = dma.done.wait [#allocation12], 2048  }
  0x6e   :  { %2107 = vsyncadd [#allocation12], 4294965248  ;;  %v2122_v0 = vmov 0.0   ;;  %vm2123_vm0 = vmmov 0   ;;  %v1713_v1 = vld [vmem:[#allocation5] sm:$0xff]   ;;  %v108_v2 = vld [vmem:[#allocation2] sm:$0xff] }
  0x6f   :  { %1685 = vmatprep.subr.bf16.mxu1 %v2122_v0  ;;  %1687 = vmatprep.mubr.msk.bf16.mxu1 %vm2123_vm0, %v2122_v0  ;;  %v110_v3 = vpack.c.bf16 %v108_v2, %v108_v2  ;;  %vm125_vm1 = vcmask 130048   ;;  %v1714_v4 = vld [vmem:[#allocation7] ss:$8 sps:$4 sm:$0xff]   ;;  %v1716_v5 = vld [vmem:[#allocation7 + $0x4] ss:$8 sps:$4 sm:$0xff]   ;;  %v2124_v20 = vmov 0  }
  0x70   :  { %1686 = vmatpush3.bf16.msra.mxu1 %v1713_v1  ;;  %v1719_v6 = vld [vmem:[#allocation7 + $0x14] ss:$8 sps:$4 sm:$0xff]   ;;  %v1717_v7 = vld [vmem:[#allocation7 + $0x10] ss:$8 sps:$4 sm:$0xff]   ;;  %v1722_v8 = vld [vmem:[#allocation7 + $0x24] ss:$8 sps:$4 sm:$0xff]  }
  0x71   :  { %279 = vmatprep.subr.bf16.mxu1 %v1716_v5  ;;  %v1720_v9 = vld [vmem:[#allocation7 + $0x20] ss:$8 sps:$4 sm:$0xff]   ;;  %v1725_v10 = vld [vmem:[#allocation7 + $0x34] ss:$8 sps:$4 sm:$0xff]   ;;  %v1723_v11 = vld [vmem:[#allocation7 + $0x30] ss:$8 sps:$4 sm:$0xff]  }
  0x72   :  { %v1728_v12 = vld [vmem:[#allocation7 + $0x44] ss:$8 sps:$4 sm:$0xff]   ;;  %v1726_v13 = vld [vmem:[#allocation7 + $0x40] ss:$8 sps:$4 sm:$0xff]   ;;  %v1731_v14 = vld [vmem:[#allocation7 + $0x54] ss:$8 sps:$4 sm:$0xff]  }
  0x73   :  { %1688 = vmatmul.mubr.msk.bf16.vlgmr.msra.gmra.mrb[0].mxu1 %vm125_vm1, %v110_v3  ;;  %v1729_v15 = vld [vmem:[#allocation7 + $0x50] ss:$8 sps:$4 sm:$0xff]   ;;  %v1734_v16 = vld [vmem:[#allocation7 + $0x64] ss:$8 sps:$4 sm:$0xff]   ;;  %v1732_v17 = vld [vmem:[#allocation7 + $0x60] ss:$8 sps:$4 sm:$0xff]  }
  0x74   :  { %280 = vmatpush1.bf16.msra.mxu1 %v1714_v4  ;;  %v1737_v18 = vld [vmem:[#allocation7 + $0x74] ss:$8 sps:$4 sm:$0xff]   ;;  %v1735_v19 = vld [vmem:[#allocation7 + $0x70] ss:$8 sps:$4 sm:$0xff]   ;;  %311 = vmatprep.mubr.bf16.mxu1 %v2124_v20  ;;  %v1497_v50 = vld [vmem:[%s2316_s6] ss:$0 sm:$0xff] }
  0x75   :  { %281 = vmatprep.subr.bf16.mxu1 %v1719_v6  ;;  %v1738_v21 = vld [vmem:[#allocation8 + $0x4] ss:$16 sps:$4 sm:$0xff]   ;;  %v1742_v22 = vld [vmem:[#allocation8 + $0xc] ss:$16 sps:$4 sm:$0xff]   ;;  %v1743_v23 = vld [vmem:[#allocation8] ss:$16 sps:$4 sm:$0xff]  }
  0x76   :  { %v1744_v24 = vld [vmem:[#allocation8 + $0x24] ss:$16 sps:$4 sm:$0xff]   ;;  %730 = vmatprep.subr.bf16.mxu0 %v1738_v21  ;;  %v1749_v25 = vld [vmem:[#allocation8 + $0x20] ss:$16 sps:$4 sm:$0xff]   ;;  %v1740_v57 = vld [vmem:[#allocation8 + $0x8] ss:$16 sps:$4 sm:$0xff]  }
  0x77   :  { %731 = vmatpush1.bf16.msra.mxu0 %v1743_v23  ;;  %v1750_v26 = vld [vmem:[#allocation8 + $0x44] ss:$16 sps:$4 sm:$0xff]   ;;  %v1755_v27 = vld [vmem:[#allocation8 + $0x40] ss:$16 sps:$4 sm:$0xff]   ;;  %v1748_v59 = vld [vmem:[#allocation8 + $0x2c] ss:$16 sps:$4 sm:$0xff]  }
  0x78   :  { %282 = vmatpush1.bf16.msra.mxu1 %v1717_v7  ;;  %732 = vmatprep.subr.bf16.mxu0 %v1744_v24  ;;  %v1756_v28 = vld [vmem:[#allocation8 + $0x64] ss:$16 sps:$4 sm:$0xff]   ;;  %v1761_v29 = vld [vmem:[#allocation8 + $0x60] ss:$16 sps:$4 sm:$0xff]   ;;  %v1746_v60 = vld [vmem:[#allocation8 + $0x28] ss:$16 sps:$4 sm:$0xff]  }
  0x79   :  { %283 = vmatprep.subr.bf16.mxu1 %v1722_v8  ;;  %v1762_v30 = vld [vmem:[#allocation8 + $0x84] ss:$16 sps:$4 sm:$0xff]   ;;  %v1767_v31 = vld [vmem:[#allocation8 + $0x80] ss:$16 sps:$4 sm:$0xff]   ;;  %v1754_v61 = vld [vmem:[#allocation8 + $0x4c] ss:$16 sps:$4 sm:$0xff]  }
  0x7a   :  { %v1768_v32 = vld [vmem:[#allocation8 + $0xa4] ss:$16 sps:$4 sm:$0xff]   ;;  %v1773_v33 = vld [vmem:[#allocation8 + $0xa0] ss:$16 sps:$4 sm:$0xff]   ;;  %v1752_v62 = vld [vmem:[#allocation8 + $0x48] ss:$16 sps:$4 sm:$0xff]  }
  0x7b   :  { %733 = vmatpush1.bf16.msra.mxu0 %v1749_v25  ;;  %v1774_v34 = vld [vmem:[#allocation8 + $0xc4] ss:$16 sps:$4 sm:$0xff]   ;;  %v1779_v35 = vld [vmem:[#allocation8 + $0xc0] ss:$16 sps:$4 sm:$0xff]   ;;  %v1760_v63 = vld [vmem:[#allocation8 + $0x6c] ss:$16 sps:$4 sm:$0xff]  }
  0x7c   :  { %284 = vmatpush1.bf16.msra.mxu1 %v1720_v9  ;;  %734 = vmatprep.subr.bf16.mxu0 %v1750_v26  ;;  %v1780_v36 = vld [vmem:[#allocation8 + $0xe4] ss:$16 sps:$4 sm:$0xff]   ;;  %v1785_v37 = vld [vmem:[#allocation8 + $0xe0] ss:$16 sps:$4 sm:$0xff]   ;;  %v1758_v0 = vld [vmem:[#allocation8 + $0x68] ss:$16 sps:$4 sm:$0xff]  }
  0x7d   :  { %285 = vmatprep.subr.bf16.mxu1 %v1725_v10  ;;  %v1786_v38 = vld [vmem:[#allocation8 + $0x104] ss:$16 sps:$4 sm:$0xff]   ;;  %v1791_v39 = vld [vmem:[#allocation8 + $0x100] ss:$16 sps:$4 sm:$0xff]   ;;  %v1766_v1 = vld [vmem:[#allocation8 + $0x8c] ss:$16 sps:$4 sm:$0xff]  }
  0x7e   :  { %v1792_v40 = vld [vmem:[#allocation8 + $0x124] ss:$16 sps:$4 sm:$0xff]   ;;  %v1797_v41 = vld [vmem:[#allocation8 + $0x120] ss:$16 sps:$4 sm:$0xff]   ;;  %v1764_v2 = vld [vmem:[#allocation8 + $0x88] ss:$16 sps:$4 sm:$0xff]  }
  0x7f   :  { %735 = vmatpush1.bf16.msra.mxu0 %v1755_v27  ;;  %v1798_v42 = vld [vmem:[#allocation8 + $0x144] ss:$16 sps:$4 sm:$0xff]   ;;  %v1803_v43 = vld [vmem:[#allocation8 + $0x140] ss:$16 sps:$4 sm:$0xff]   ;;  %v1772_v3 = vld [vmem:[#allocation8 + $0xac] ss:$16 sps:$4 sm:$0xff]  }
  0x80   :  { %286 = vmatpush1.bf16.msra.mxu1 %v1723_v11  ;;  %736 = vmatprep.subr.bf16.mxu0 %v1756_v28  ;;  %v1804_v44 = vld [vmem:[#allocation8 + $0x164] ss:$16 sps:$4 sm:$0xff]   ;;  %v1809_v45 = vld [vmem:[#allocation8 + $0x160] ss:$16 sps:$4 sm:$0xff]   ;;  %v1770_v4 = vld [vmem:[#allocation8 + $0xa8] ss:$16 sps:$4 sm:$0xff]  }
  0x81   :  { %287 = vmatprep.subr.bf16.mxu1 %v1728_v12  ;;  %v1810_v46 = vld [vmem:[#allocation8 + $0x184] ss:$16 sps:$4 sm:$0xff]   ;;  %v1815_v47 = vld [vmem:[#allocation8 + $0x180] ss:$16 sps:$4 sm:$0xff]   ;;  %v1778_v5 = vld [vmem:[#allocation8 + $0xcc] ss:$16 sps:$4 sm:$0xff]  }
  0x82   :  { %v1816_v48 = vld [vmem:[#allocation8 + $0x1a4] ss:$16 sps:$4 sm:$0xff]   ;;  %v1821_v49 = vld [vmem:[#allocation8 + $0x1a0] ss:$16 sps:$4 sm:$0xff]   ;;  %v1776_v6 = vld [vmem:[#allocation8 + $0xc8] ss:$16 sps:$4 sm:$0xff]  }
  0x83   :  { %737 = vmatpush1.bf16.msra.mxu0 %v1761_v29  ;;  %v1784_v7 = vld [vmem:[#allocation8 + $0xec] ss:$16 sps:$4 sm:$0xff]   ;;  %v1782_v8 = vld [vmem:[#allocation8 + $0xe8] ss:$16 sps:$4 sm:$0xff]   ;;  %v1822_v21 = vld [vmem:[#allocation8 + $0x1c4] ss:$16 sps:$4 sm:$0xff]  }
  0x84   :  { %288 = vmatpush1.bf16.msra.mxu1 %v1726_v13  ;;  %738 = vmatprep.subr.bf16.mxu0 %v1762_v30  ;;  %v1790_v9 = vld [vmem:[#allocation8 + $0x10c] ss:$16 sps:$4 sm:$0xff]   ;;  %v1788_v10 = vld [vmem:[#allocation8 + $0x108] ss:$16 sps:$4 sm:$0xff]   ;;  %v1827_v24 = vld [vmem:[#allocation8 + $0x1c0] ss:$16 sps:$4 sm:$0xff]   ;;  %v189_v30 = vlaneseq }
  0x85   :  { %289 = vmatprep.subr.bf16.mxu1 %v1731_v14  ;;  %v1796_v11 = vld [vmem:[#allocation8 + $0x12c] ss:$16 sps:$4 sm:$0xff]   ;;  %v1794_v12 = vld [vmem:[#allocation8 + $0x128] ss:$16 sps:$4 sm:$0xff]   ;;  %v1828_v25 = vld [vmem:[#allocation8 + $0x1e4] ss:$16 sps:$4 sm:$0xff]  }
  0x86   :  { %v1802_v13 = vld [vmem:[#allocation8 + $0x14c] ss:$16 sps:$4 sm:$0xff]   ;;  %v1800_v14 = vld [vmem:[#allocation8 + $0x148] ss:$16 sps:$4 sm:$0xff]   ;;  %v1833_v28 = vld [vmem:[#allocation8 + $0x1e0] ss:$16 sps:$4 sm:$0xff]  }
  0x87   :  { %739 = vmatpush1.bf16.msra.mxu0 %v1767_v31  ;;  %v1818_v20 = vld [vmem:[#allocation8 + $0x1a8] ss:$16 sps:$4 sm:$0xff]   ;;  %v1832_v26 = vld [vmem:[#allocation8 + $0x1ec] ss:$16 sps:$4 sm:$0xff]   ;;  %v2261_v31 = vshrl.u32 %v189_v30, 7  ;;  %s2125_s15 = smov [#allocation13]  }
  0x88   :  { %290 = vmatpush1.bf16.msra.mxu1 %v1729_v15  ;;  %740 = vmatprep.subr.bf16.mxu0 %v1768_v32  ;;  %v1808_v15 = vld [vmem:[#allocation8 + $0x16c] ss:$16 sps:$4 sm:$0xff]   ;;  %v1824_v23 = vld [vmem:[#allocation8 + $0x1c8] ss:$16 sps:$4 sm:$0xff]   ;;  %s1485_s17 = sshll.u32 %s2125_s15, 4  ;;  %s1486_s17 = int_to_ptr.vmem [resolvable:$true] %s1485_s17 }
  0x89   :  { %291 = vmatprep.subr.bf16.mxu1 %v1734_v16  ;;  %v1806_v16 = vld [vmem:[#allocation8 + $0x168] ss:$16 sps:$4 sm:$0xff]   ;;  %v1836_v29 = vld [vmem:[#allocation10 + $0x4] ss:$8 sps:$4 sm:$0xff]   ;;  %v2264_v32 = vsub.s32 0, %v2261_v31  ;;  %s2078_s18 = scalar_lea.vmem %s1486_s17, 128  ;;  %p2083_p7 = scmp.lt.s32.totalorder %s1486_s17, %s1486_s17 }
  0x8a   :  { %v1830_v27 = vld [vmem:[#allocation8 + $0x1e8] ss:$16 sps:$4 sm:$0xff]   ;;  %p2079_p6 = scmp.ne.s32.totalorder %s1486_s17, %s2078_s18  ;;  %p2084_p8 = scmp.lt.s32.totalorder %s2078_s18, %s2078_s18 }
  0x8b   :  { %741 = vmatpush1.bf16.msra.mxu0 %v1773_v33  ;;  %v170_v33 = vld [vmem:[%s2316_s6 + $0x1] sm:$0x3] }
  0x8c   :  { %292 = vmatpush1.bf16.msra.mxu1 %v1732_v17  ;;  %742 = vmatprep.subr.bf16.mxu0 %v1774_v34  ;;  %v1814_v17 = vld [vmem:[#allocation8 + $0x18c] ss:$16 sps:$4 sm:$0xff]   ;;  %v2270_v34 = vsub.s32 1, %v2261_v31  ;;  %p2085_p9 = por %p2084_p8, %p2083_p7 }
  0x8d   :  { %293 = vmatprep.subr.bf16.mxu1 %v1737_v18  ;;  %v1812_v18 = vld [vmem:[#allocation8 + $0x188] ss:$16 sps:$4 sm:$0xff]  }
  0x8e   :  { %p2086_p10 = pnand %p2085_p9, %p2079_p6 }
  0x8f   :  { %743 = vmatpush1.bf16.msra.mxu0 %v1779_v35  ;;  %v192_v35 = vrot.slane %v170_v33, %v2264_v32 }
  0x90   :  { %294 = vmatpush1.bf16.msra.mxu1 %v1735_v19  ;;  %744 = vmatprep.subr.bf16.mxu0 %v1780_v36  ;;  %v1820_v19 = vld [vmem:[#allocation8 + $0x1ac] ss:$16 sps:$4 sm:$0xff]   ;;  %v196_v36 = vrot.slane %v170_v33, %v2270_v34 }
  0x91   :  { %771 = vmatprep.subr.bf16.mxu1 %v1742_v22  ;;  %v1826_v22 = vld [vmem:[#allocation8 + $0x1cc] ss:$16 sps:$4 sm:$0xff]  }
  0x93   :  { %745 = vmatpush1.bf16.msra.mxu0 %v1785_v37 }
  0x94   :  { %746 = vmatprep.subr.bf16.mxu0 %v1786_v38 }
  0x97   :  { %747 = vmatpush1.bf16.msra.mxu0 %v1791_v39 }
  0x98   :  { %748 = vmatprep.subr.bf16.mxu0 %v1792_v40 }
  0x9b   :  { %749 = vmatpush1.bf16.msra.mxu0 %v1797_v41 }
  0x9c   :  { %750 = vmatprep.subr.bf16.mxu0 %v1798_v42 }
  0x9f   :  { %751 = vmatpush1.bf16.msra.mxu0 %v1803_v43 }
  0xa0   :  { %752 = vmatprep.subr.bf16.mxu0 %v1804_v44 }
  0xa3   :  { %753 = vmatpush1.bf16.msra.mxu0 %v1809_v45 }
  0xa4   :  { %754 = vmatprep.subr.bf16.mxu0 %v1810_v46  ;;  %v1834_v46 = vld [vmem:[#allocation10] ss:$8 sps:$4 sm:$0xff]  }
  0xa7   :  { %755 = vmatpush1.bf16.msra.mxu0 %v1815_v47 }
  0xa8   :  { %756 = vmatprep.subr.bf16.mxu0 %v1816_v48  ;;  %v1839_v48 = vld [vmem:[#allocation10 + $0x14] ss:$8 sps:$4 sm:$0xff]  }
  0xab   :  { %757 = vmatpush1.bf16.msra.mxu0 %v1821_v49  ;;  %v1837_v49 = vld [vmem:[#allocation10 + $0x10] ss:$8 sps:$4 sm:$0xff]  }
  0xac   :  { %758 = vmatprep.subr.bf16.mxu0 %v1822_v21  ;;  %v1936_v21 = vld [vmem:[#allocation11 + $0x58] sm:$0xff]  }
  0xaf   :  { %759 = vmatpush1.bf16.msra.mxu0 %v1827_v24  ;;  %v1939_v24 = vld [vmem:[#allocation11 + $0x20] sm:$0xff]  }
  0xb0   :  { %760 = vmatprep.subr.bf16.mxu0 %v1828_v25  ;;  %v1940_v25 = vld [vmem:[#allocation11 + $0x68] sm:$0xff]  }
  0xb3   :  { %761 = vmatpush1.bf16.msra.mxu0 %v1833_v28  ;;  %v404_v28 = vsub.s32 3, %v2261_v31 }
  0xb4   :  { %1216 = vmatprep.subr.bf16.mxu0 %v1836_v29 }
 0x146   :  { %v163_v51 = vpop.f32.mrb[0].mxu1 }
 0x147   :  { %v164_v52 = vadd.f32 %v1497_v50, %v163_v51  ;;  %v1689_v53 = vpop.f32.mrb[1].mxu1  ;;  %v1842_v50 = vld [vmem:[#allocation10 + $0x24] ss:$8 sps:$4 sm:$0xff]   ;;  %v1840_v51 = vld [vmem:[#allocation10 + $0x20] ss:$8 sps:$4 sm:$0xff]  }
 0x148   :  { %v166_v54 = vpop.f32.mrb[2].mxu1  ;;  %v1843_v53 = vld [vmem:[#allocation10 + $0x30] ss:$8 sps:$4 sm:$0xff]  }
 0x149   :  { %v169_v55 = vmax.f32 %v164_v52, 0.0  ;;  %v1690_v56 = vpop.f32.mrb[3].mxu1  ;;  %v1845_v52 = vld [vmem:[#allocation10 + $0x34] ss:$8 sps:$4 sm:$0xff]   ;;  %v1848_v54 = vld [vmem:[#allocation10 + $0x44] ss:$8 sps:$4 sm:$0xff]  }
 0x14a   :  { %v1851_v56 = vld [vmem:[#allocation10 + $0x54] ss:$8 sps:$4 sm:$0xff]  }
 0x14b   :  { %v171_v58 = vpack.c.bf16 %v169_v55, %v169_v55  ;;  %v1846_v55 = vld [vmem:[#allocation10 + $0x40] ss:$8 sps:$4 sm:$0xff]  }
 0x14d   :  { %312 = vmatmul.mubr.bf16.vlgmr.msra.gmra.mrb[4].mxu1 %v171_v58  ;;  %v1854_v58 = vld [vmem:[#allocation10 + $0x64] ss:$8 sps:$4 sm:$0xff]  }
 0x14e   :  { %772 = vmatpush1.bf16.msra.mxu1 %v1740_v57  ;;  %v1849_v57 = vld [vmem:[#allocation10 + $0x50] ss:$8 sps:$4 sm:$0xff]  }
 0x14f   :  { %773 = vmatprep.subr.bf16.mxu1 %v1748_v59  ;;  %v1852_v59 = vld [vmem:[#allocation10 + $0x60] ss:$8 sps:$4 sm:$0xff]  }
 0x152   :  { %774 = vmatpush1.bf16.msra.mxu1 %v1746_v60  ;;  %v1857_v60 = vld [vmem:[#allocation10 + $0x74] ss:$8 sps:$4 sm:$0xff]  }
 0x153   :  { %775 = vmatprep.subr.bf16.mxu1 %v1754_v61  ;;  %v1855_v61 = vld [vmem:[#allocation10 + $0x70] ss:$8 sps:$4 sm:$0xff]  }
 0x156   :  { %776 = vmatpush1.bf16.msra.mxu1 %v1752_v62  ;;  %v1860_v62 = vld [vmem:[#allocation10 + $0x84] ss:$8 sps:$4 sm:$0xff]  }
 0x157   :  { %777 = vmatprep.subr.bf16.mxu1 %v1760_v63  ;;  %v1858_v63 = vld [vmem:[#allocation10 + $0x80] ss:$8 sps:$4 sm:$0xff]  }
 0x15a   :  { %778 = vmatpush1.bf16.msra.mxu1 %v1758_v0  ;;  %v1863_v0 = vld [vmem:[#allocation10 + $0x94] ss:$8 sps:$4 sm:$0xff]  }
 0x15b   :  { %779 = vmatprep.subr.bf16.mxu1 %v1766_v1  ;;  %v1861_v1 = vld [vmem:[#allocation10 + $0x90] ss:$8 sps:$4 sm:$0xff]  }
 0x15e   :  { %780 = vmatpush1.bf16.msra.mxu1 %v1764_v2  ;;  %v1866_v2 = vld [vmem:[#allocation10 + $0xa4] ss:$8 sps:$4 sm:$0xff]  }
 0x15f   :  { %781 = vmatprep.subr.bf16.mxu1 %v1772_v3  ;;  %v1864_v3 = vld [vmem:[#allocation10 + $0xa0] ss:$8 sps:$4 sm:$0xff]  }
 0x162   :  { %782 = vmatpush1.bf16.msra.mxu1 %v1770_v4  ;;  %v1869_v4 = vld [vmem:[#allocation10 + $0xb4] ss:$8 sps:$4 sm:$0xff]  }
 0x163   :  { %783 = vmatprep.subr.bf16.mxu1 %v1778_v5  ;;  %v1867_v5 = vld [vmem:[#allocation10 + $0xb0] ss:$8 sps:$4 sm:$0xff]  }
 0x166   :  { %784 = vmatpush1.bf16.msra.mxu1 %v1776_v6  ;;  %v1872_v6 = vld [vmem:[#allocation10 + $0xc4] ss:$8 sps:$4 sm:$0xff]  }
 0x167   :  { %785 = vmatprep.subr.bf16.mxu1 %v1784_v7  ;;  %v1870_v7 = vld [vmem:[#allocation10 + $0xc0] ss:$8 sps:$4 sm:$0xff]  }
 0x16a   :  { %786 = vmatpush1.bf16.msra.mxu1 %v1782_v8  ;;  %v1875_v8 = vld [vmem:[#allocation10 + $0xd4] ss:$8 sps:$4 sm:$0xff]  }
 0x16b   :  { %787 = vmatprep.subr.bf16.mxu1 %v1790_v9  ;;  %v1873_v9 = vld [vmem:[#allocation10 + $0xd0] ss:$8 sps:$4 sm:$0xff]  }
 0x16e   :  { %788 = vmatpush1.bf16.msra.mxu1 %v1788_v10  ;;  %v1878_v10 = vld [vmem:[#allocation10 + $0xe4] ss:$8 sps:$4 sm:$0xff]  }
 0x16f   :  { %789 = vmatprep.subr.bf16.mxu1 %v1796_v11  ;;  %v1876_v11 = vld [vmem:[#allocation10 + $0xe0] ss:$8 sps:$4 sm:$0xff]  }
 0x172   :  { %790 = vmatpush1.bf16.msra.mxu1 %v1794_v12  ;;  %v1881_v12 = vld [vmem:[#allocation10 + $0xf4] ss:$8 sps:$4 sm:$0xff]  }
 0x173   :  { %791 = vmatprep.subr.bf16.mxu1 %v1802_v13  ;;  %v1879_v13 = vld [vmem:[#allocation10 + $0xf0] ss:$8 sps:$4 sm:$0xff]  }
 0x176   :  { %792 = vmatpush1.bf16.msra.mxu1 %v1800_v14  ;;  %v1884_v14 = vld [vmem:[#allocation10 + $0x104] ss:$8 sps:$4 sm:$0xff]  }
 0x177   :  { %793 = vmatprep.subr.bf16.mxu1 %v1808_v15  ;;  %v1930_v15 = vld [vmem:[#allocation11 + $0x40] sm:$0xff]  }
 0x17a   :  { %794 = vmatpush1.bf16.msra.mxu1 %v1806_v16  ;;  %v1931_v16 = vld [vmem:[#allocation11] sm:$0xff]  }
 0x17b   :  { %795 = vmatprep.subr.bf16.mxu1 %v1814_v17  ;;  %v1932_v17 = vld [vmem:[#allocation11 + $0x48] sm:$0xff]  }
 0x17e   :  { %796 = vmatpush1.bf16.msra.mxu1 %v1812_v18  ;;  %v1933_v18 = vld [vmem:[#allocation11 + $0x8] sm:$0xff]  }
 0x17f   :  { %797 = vmatprep.subr.bf16.mxu1 %v1820_v19  ;;  %v1934_v19 = vld [vmem:[#allocation11 + $0x50] sm:$0xff]  }
 0x182   :  { %798 = vmatpush1.bf16.msra.mxu1 %v1818_v20  ;;  %v1935_v20 = vld [vmem:[#allocation11 + $0x10] sm:$0xff]  }
 0x183   :  { %799 = vmatprep.subr.bf16.mxu1 %v1826_v22  ;;  %v1937_v22 = vld [vmem:[#allocation11 + $0x18] sm:$0xff]  }
 0x186   :  { %800 = vmatpush1.bf16.msra.mxu1 %v1824_v23  ;;  %v1938_v23 = vld [vmem:[#allocation11 + $0x60] sm:$0xff]  }
 0x187   :  { %801 = vmatprep.subr.bf16.mxu1 %v1832_v26  ;;  %v1941_v26 = vld [vmem:[#allocation11 + $0x28] sm:$0xff]  }
 0x18a   :  { %802 = vmatpush1.bf16.msra.mxu1 %v1830_v27  ;;  %v2277_v27 = vld [vmem:[%s2316_s6 + $0x3] sm:$0xf] }
 0x18b   :  { %1663 = vmatprep.subr.bf16.mxu1 %v1930_v15  ;;  %v393_v29 = vrot.slane %v2277_v27, %v2264_v32  ;;  %v397_v30 = vrot.slane %v2277_v27, %v2270_v34  ;;  %v405_v33 = vrot.slane %v2277_v27, %v404_v28  ;;  %v1921_v15 = vld [vmem:[#allocation10 + $0x1d0] ss:$8 sps:$4 sm:$0xff]  }
 0x220   :  { %v313_v37 = vpop.f32.mrb[4].mxu1 }
 0x221   :  { %v314_v38 = vadd.f32 %v313_v37, %v192_v35  ;;  %v315_v39 = vpop.f32.mrb[5].mxu1 }
 0x222   :  { %v316_v40 = vadd.f32 %v315_v39, %v196_v36  ;;  %v317_v41 = vpop.f32.mrb[6].mxu1 }
 0x223   :  { %v320_v42 = vmax.f32 %v314_v38, 0.0  ;;  %v318_v43 = vpop.f32.mrb[7].mxu1 }
 0x224   :  { %v321_v44 = vmax.f32 %v316_v40, 0.0 }
 0x225   :  { %v323_v47 = vpack.c.bf16 %v320_v42, %v320_v42 }
 0x226   :  { %v324_v45 = vpack.c.bf16 %v321_v44, %v321_v44 }
 0x228   :  { %762 = vmatprep.mubr.bf16.mxu0 %v324_v45  ;;  %803 = vmatprep.mubr.bf16.mxu1 %v324_v45 }
 0x229   :  { %763 = vmatmul.mubr.bf16.vlgmr.msra.gmra.mrb[0].mxu0 %v323_v47  ;;  %804 = vmatmul.mubr.bf16.vlgmr.msra.gmra.mrb[8].mxu1 %v323_v47 }
 0x22a   :  { %1217 = vmatpush1.bf16.msra.mxu0 %v1834_v46  ;;  %1664 = vmatpush3.bf16.msra.mxu1 %v1931_v16 }
 0x22b   :  { %1218 = vmatprep.subr.bf16.mxu0 %v1839_v48  ;;  %1665 = vmatprep.subr.bf16.mxu1 %v1932_v17  ;;  %v1926_v17 = vld [vmem:[#allocation10 + $0x1e4] ss:$8 sps:$4 sm:$0xff]  }
 0x22e   :  { %1219 = vmatpush1.bf16.msra.mxu0 %v1837_v49  ;;  %1666 = vmatpush3.bf16.msra.mxu1 %v1933_v18  ;;  %v1924_v18 = vld [vmem:[#allocation10 + $0x1e0] ss:$8 sps:$4 sm:$0xff]  }
 0x22f   :  { %1220 = vmatprep.subr.bf16.mxu0 %v1842_v50  ;;  %1667 = vmatprep.subr.bf16.mxu1 %v1934_v19  ;;  %v1882_v50 = vld [vmem:[#allocation10 + $0x100] ss:$8 sps:$4 sm:$0xff]  }
 0x232   :  { %1221 = vmatpush1.bf16.msra.mxu0 %v1840_v51  ;;  %1668 = vmatpush3.bf16.msra.mxu1 %v1935_v20  ;;  %v1929_v20 = vld [vmem:[#allocation10 + $0x1f4] ss:$8 sps:$4 sm:$0xff]  }
 0x233   :  { %1222 = vmatprep.subr.bf16.mxu0 %v1845_v52  ;;  %1669 = vmatprep.subr.bf16.mxu1 %v1936_v21  ;;  %v1887_v52 = vld [vmem:[#allocation10 + $0x114] ss:$8 sps:$4 sm:$0xff]   ;;  %v1927_v21 = vld [vmem:[#allocation10 + $0x1f0] ss:$8 sps:$4 sm:$0xff]  }
 0x236   :  { %1223 = vmatpush1.bf16.msra.mxu0 %v1843_v53  ;;  %1670 = vmatpush3.bf16.msra.mxu1 %v1937_v22 }
 0x237   :  { %1224 = vmatprep.subr.bf16.mxu0 %v1848_v54  ;;  %1671 = vmatprep.subr.bf16.mxu1 %v1938_v23  ;;  %v1885_v54 = vld [vmem:[#allocation10 + $0x110] ss:$8 sps:$4 sm:$0xff]  }
 0x238   :  { %v1942_v23 = vld [vmem:[#allocation11 + $0x70] sm:$0xff]  }
 0x23a   :  { %1225 = vmatpush1.bf16.msra.mxu0 %v1846_v55  ;;  %1672 = vmatpush3.bf16.msra.mxu1 %v1939_v24  ;;  %v1890_v55 = vld [vmem:[#allocation10 + $0x124] ss:$8 sps:$4 sm:$0xff]   ;;  %v1943_v24 = vld [vmem:[#allocation11 + $0x30] sm:$0xff]  }
 0x23b   :  { %1226 = vmatprep.subr.bf16.mxu0 %v1851_v56  ;;  %1673 = vmatprep.subr.bf16.mxu1 %v1940_v25  ;;  %v1888_v56 = vld [vmem:[#allocation10 + $0x120] ss:$8 sps:$4 sm:$0xff]   ;;  %v1944_v25 = vld [vmem:[#allocation11 + $0x78] sm:$0xff]  }
 0x23e   :  { %1227 = vmatpush1.bf16.msra.mxu0 %v1849_v57  ;;  %1674 = vmatpush3.bf16.msra.mxu1 %v1941_v26  ;;  %v1893_v57 = vld [vmem:[#allocation10 + $0x134] ss:$8 sps:$4 sm:$0xff]  }
 0x23f   :  { %1228 = vmatprep.subr.bf16.mxu0 %v1854_v58  ;;  %v1891_v58 = vld [vmem:[#allocation10 + $0x130] ss:$8 sps:$4 sm:$0xff]   ;;  %1675 = vmatprep.subr.bf16.mxu1 %v1942_v23 }
 0x240   :  { %v1945_v26 = vld [vmem:[#allocation11 + $0x38] sm:$0xff]  }
 0x242   :  { %1229 = vmatpush1.bf16.msra.mxu0 %v1852_v59  ;;  %v1896_v59 = vld [vmem:[#allocation10 + $0x144] ss:$8 sps:$4 sm:$0xff]   ;;  %1676 = vmatpush3.bf16.msra.mxu1 %v1943_v24 }
 0x243   :  { %1230 = vmatprep.subr.bf16.mxu0 %v1857_v60  ;;  %v1894_v60 = vld [vmem:[#allocation10 + $0x140] ss:$8 sps:$4 sm:$0xff]   ;;  %1677 = vmatprep.subr.bf16.mxu1 %v1944_v25 }
 0x246   :  { %1231 = vmatpush1.bf16.msra.mxu0 %v1855_v61  ;;  %v1899_v61 = vld [vmem:[#allocation10 + $0x154] ss:$8 sps:$4 sm:$0xff]   ;;  %1678 = vmatpush3.bf16.msra.mxu1 %v1945_v26 }
 0x247   :  { %1232 = vmatprep.subr.bf16.mxu0 %v1860_v62  ;;  %v1897_v62 = vld [vmem:[#allocation10 + $0x150] ss:$8 sps:$4 sm:$0xff]  }
 0x24a   :  { %1233 = vmatpush1.bf16.msra.mxu0 %v1858_v63  ;;  %v1902_v63 = vld [vmem:[#allocation10 + $0x164] ss:$8 sps:$4 sm:$0xff]  }
 0x24b   :  { %1234 = vmatprep.subr.bf16.mxu0 %v1863_v0  ;;  %v1900_v0 = vld [vmem:[#allocation10 + $0x160] ss:$8 sps:$4 sm:$0xff]  }
 0x24e   :  { %1235 = vmatpush1.bf16.msra.mxu0 %v1861_v1  ;;  %v1905_v1 = vld [vmem:[#allocation10 + $0x174] ss:$8 sps:$4 sm:$0xff]  }
 0x24f   :  { %1236 = vmatprep.subr.bf16.mxu0 %v1866_v2  ;;  %v1903_v2 = vld [vmem:[#allocation10 + $0x170] ss:$8 sps:$4 sm:$0xff]  }
 0x252   :  { %1237 = vmatpush1.bf16.msra.mxu0 %v1864_v3  ;;  %v1908_v3 = vld [vmem:[#allocation10 + $0x184] ss:$8 sps:$4 sm:$0xff]  }
 0x253   :  { %1238 = vmatprep.subr.bf16.mxu0 %v1869_v4  ;;  %v1906_v4 = vld [vmem:[#allocation10 + $0x180] ss:$8 sps:$4 sm:$0xff]  }
 0x256   :  { %1239 = vmatpush1.bf16.msra.mxu0 %v1867_v5  ;;  %v1911_v5 = vld [vmem:[#allocation10 + $0x194] ss:$8 sps:$4 sm:$0xff]  }
 0x257   :  { %1240 = vmatprep.subr.bf16.mxu0 %v1872_v6  ;;  %v1909_v6 = vld [vmem:[#allocation10 + $0x190] ss:$8 sps:$4 sm:$0xff]  }
 0x25a   :  { %1241 = vmatpush1.bf16.msra.mxu0 %v1870_v7  ;;  %v1914_v7 = vld [vmem:[#allocation10 + $0x1a4] ss:$8 sps:$4 sm:$0xff]  }
 0x25b   :  { %1242 = vmatprep.subr.bf16.mxu0 %v1875_v8  ;;  %v1912_v8 = vld [vmem:[#allocation10 + $0x1a0] ss:$8 sps:$4 sm:$0xff]  }
 0x25e   :  { %1243 = vmatpush1.bf16.msra.mxu0 %v1873_v9  ;;  %v1917_v9 = vld [vmem:[#allocation10 + $0x1b4] ss:$8 sps:$4 sm:$0xff]  }
 0x25f   :  { %1244 = vmatprep.subr.bf16.mxu0 %v1878_v10  ;;  %v1915_v10 = vld [vmem:[#allocation10 + $0x1b0] ss:$8 sps:$4 sm:$0xff]  }
 0x262   :  { %1245 = vmatpush1.bf16.msra.mxu0 %v1876_v11  ;;  %v1920_v11 = vld [vmem:[#allocation10 + $0x1c4] ss:$8 sps:$4 sm:$0xff]  }
 0x263   :  { %1246 = vmatprep.subr.bf16.mxu0 %v1881_v12  ;;  %v1918_v12 = vld [vmem:[#allocation10 + $0x1c0] ss:$8 sps:$4 sm:$0xff]  }
 0x266   :  { %1247 = vmatpush1.bf16.msra.mxu0 %v1879_v13  ;;  %v400_v13 = vsub.s32 2, %v2261_v31 }
 0x267   :  { %1257 = vmatprep.subr.bf16.mxu0 %v1884_v14  ;;  %v1923_v14 = vld [vmem:[#allocation10 + $0x1d4] ss:$8 sps:$4 sm:$0xff]  }
 0x268   :  { %v401_v16 = vrot.slane %v2277_v27, %v400_v13  ;;  %v816_v27 = vld [vmem:[%s2316_s6 + $0x7] sm:$0x3] }
 0x269   :  { %v889_v28 = vrot.slane %v816_v27, %v2264_v32 }
 0x2fc   :  { %v764_v35 = vpop.f32.mrb[0].mxu0  ;;  %v2285_v36 = vpop.f32.mrb[8].mxu1 }
 0x2fd   :  { %v765_v37 = vadd.f32 %v764_v35, %v393_v29  ;;  %v766_v38 = vpop.f32.mrb[1].mxu0  ;;  %v807_v39 = vpop.f32.mrb[9].mxu1  ;;  %v806_v19 = vadd.f32 %v2285_v36, %v401_v16  ;;  %v893_v29 = vrot.slane %v816_v27, %v2270_v34 }
 0x2fe   :  { %v767_v40 = vadd.f32 %v766_v38, %v397_v30  ;;  %v808_v41 = vadd.f32 %v807_v39, %v405_v33  ;;  %v768_v42 = vpop.f32.mrb[2].mxu0  ;;  %v809_v43 = vpop.f32.mrb[10].mxu1 }
 0x2ff   :  { %v812_v44 = vmax.f32 %v765_v37, 0.0  ;;  %v769_v45 = vpop.f32.mrb[3].mxu0  ;;  %v810_v46 = vpop.f32.mrb[11].mxu1  ;;  %v814_v22 = vmax.f32 %v806_v19, 0.0 }
 0x300   :  { %v813_v47 = vmax.f32 %v767_v40, 0.0  ;;  %v815_v48 = vmax.f32 %v808_v41, 0.0 }
 0x301   :  { %v817_v51 = vpack.c.bf16 %v812_v44, %v812_v44  ;;  %v819_v31 = vpack.c.bf16 %v814_v22, %v814_v22  ;;  %v1644_v44 = vld [vmem:[%s2316_s6 + $0x9] ss:$0 sm:$0xff] }
 0x302   :  { %v818_v49 = vpack.c.bf16 %v813_v47, %v813_v47  ;;  %v820_v53 = vpack.c.bf16 %v815_v48, %v815_v48 }
 0x304   :  { %1248 = vmatprep.mubr.bf16.mxu0 %v818_v49 }
 0x305   :  { %1249 = vmatmul.mubr.bf16.vlgmr.msra.gmra.mrb[4].mxu0 %v817_v51 }
 0x306   :  { %1258 = vmatpush1.bf16.msra.mxu0 %v1882_v50  ;;  %1289 = vmatprep.mubr.bf16.mxu0 %v820_v53 }
 0x307   :  { %1259 = vmatprep.subr.bf16.mxu0 %v1887_v52 }
 0x30a   :  { %1260 = vmatpush1.bf16.msra.mxu0 %v1885_v54 }
 0x30b   :  { %1261 = vmatprep.subr.bf16.mxu0 %v1890_v55 }
 0x30e   :  { %1262 = vmatpush1.bf16.msra.mxu0 %v1888_v56 }
 0x30f   :  { %1263 = vmatprep.subr.bf16.mxu0 %v1893_v57 }
 0x312   :  { %1264 = vmatpush1.bf16.msra.mxu0 %v1891_v58 }
 0x313   :  { %1265 = vmatprep.subr.bf16.mxu0 %v1896_v59 }
 0x316   :  { %1266 = vmatpush1.bf16.msra.mxu0 %v1894_v60 }
 0x317   :  { %1267 = vmatprep.subr.bf16.mxu0 %v1899_v61 }
 0x31a   :  { %1268 = vmatpush1.bf16.msra.mxu0 %v1897_v62 }
 0x31b   :  { %1269 = vmatprep.subr.bf16.mxu0 %v1902_v63 }
 0x31e   :  { %1270 = vmatpush1.bf16.msra.mxu0 %v1900_v0 }
 0x31f   :  { %1271 = vmatprep.subr.bf16.mxu0 %v1905_v1 }
 0x322   :  { %1272 = vmatpush1.bf16.msra.mxu0 %v1903_v2 }
 0x323   :  { %1273 = vmatprep.subr.bf16.mxu0 %v1908_v3 }
 0x326   :  { %1274 = vmatpush1.bf16.msra.mxu0 %v1906_v4 }
 0x327   :  { %1275 = vmatprep.subr.bf16.mxu0 %v1911_v5 }
 0x32a   :  { %1276 = vmatpush1.bf16.msra.mxu0 %v1909_v6 }
 0x32b   :  { %1277 = vmatprep.subr.bf16.mxu0 %v1914_v7 }
 0x32e   :  { %1278 = vmatpush1.bf16.msra.mxu0 %v1912_v8 }
 0x32f   :  { %1279 = vmatprep.subr.bf16.mxu0 %v1917_v9 }
 0x332   :  { %1280 = vmatpush1.bf16.msra.mxu0 %v1915_v10 }
 0x333   :  { %1281 = vmatprep.subr.bf16.mxu0 %v1920_v11 }
 0x336   :  { %1282 = vmatpush1.bf16.msra.mxu0 %v1918_v12 }
 0x337   :  { %1283 = vmatprep.subr.bf16.mxu0 %v1923_v14 }
 0x33a   :  { %1284 = vmatpush1.bf16.msra.mxu0 %v1921_v15 }
 0x33b   :  { %1285 = vmatprep.subr.bf16.mxu0 %v1926_v17 }
 0x33e   :  { %1286 = vmatpush1.bf16.msra.mxu0 %v1924_v18 }
 0x33f   :  { %1287 = vmatprep.subr.bf16.mxu0 %v1929_v20 }
 0x342   :  { %1288 = vmatpush1.bf16.msra.mxu0 %v1927_v21 }
 0x345   :  { %1290 = vmatmul.mubr.bf16.vlgmr.msra.gmra.mrb[4].mxu0 %v819_v31 }
 0x418   :  { %v1291_v30 = vpop.f32.mrb[4].mxu0 }
 0x419   :  { %v1691_v33 = vadd.f32 %v1291_v30, %v889_v28  ;;  %v1293_v35 = vpop.f32.mrb[5].mxu0 }
 0x41a   :  { %v1692_v36 = vadd.f32 %v1293_v35, %v893_v29  ;;  %v1295_v37 = vpop.f32.mrb[6].mxu0 }
 0x41b   :  { %v1298_v38 = vmax.f32 %v1691_v33, 0.0  ;;  %v1296_v39 = vpop.f32.mrb[7].mxu0 }
 0x41c   :  { %v1299_v40 = vmax.f32 %v1692_v36, 0.0 }
 0x41d   :  { %v1301_v42 = vpack.c.bf16 %v1298_v38, %v1298_v38 }
 0x41e   :  { %v1302_v41 = vpack.c.bf16 %v1299_v40, %v1299_v40 }
 0x420   :  { %1469 = vmatprep.mubr.bf16.mxu1 %v1302_v41 }
 0x421   :  { %1470 = vmatmul.mubr.bf16.vlgmr.msra.gmra.mrb[12].mxu1 %v1301_v42 }
 0x4f4   :  { %v1679_v43 = vpop.f32.mrb[12].mxu1 }
 0x4f5   :  { %v1680_v32 = vpop.f32.mrb[13].mxu1 }
 0x4f6   :  { %v1681_v45 = vadd.f32 %v1680_v32, %v1679_v43  ;;  %v1682_v34 = vpop.f32.mrb[14].mxu1 }
 0x4f7   :  { %v1683_v46 = vpop.f32.mrb[15].mxu1 }
 0x4f8   :  { %v1472_v47 = vadd.f32 %v1681_v45, %v1644_v44 }
 0x4fa   :  { %v1477_v48 = vmax.f32 %v1472_v47, 0.0 }
 0x4fc   :  { %1478 = vst [vmem:[#allocation13] sm:$0xff] %v1477_v48 }
 0x4fd   :  { %2089 = shalt.err (!%p2086_p10)
}
 0x4fe   :  { %s2090_s6 = scalar_lea.hbm %s2317_s7, 128 }
 0x4ff   :  { %p2091_p11 = scmp.ne.s32.totalorder %s2317_s7, %s2090_s6  ;;  %p2094_p12 = scmp.lt.u32.totalorder %s2090_s6, %s2317_s7 }
 0x501   :  { %p2096_p13 = pnand %p2094_p12, %p2091_p11 }
 0x503   :  { %2099 = shalt.err (!%p2096_p13)
}
 0x504   :  { %1488 = dma.vmem_to_hbm [thread:$0]  %s1486_s17, 128, %s2317_s7, [#allocation4]  }
 0x505   :  { %2108 = dma.done.wait [#allocation4], 128  }
 0x506   :  { %2109 = vsyncadd [#allocation4], 4294967168 }
 0x507   :  { %1492 = vsyncpa [#allocation3], 1 }
 0x508   :  { %1493 = vsyncpa [#allocation6], 1 }
 0x509   :  { %1494 = vsyncpa [#allocation9], 1 }
 0x50a   :  { %1495 = vsyncpa [#allocation12], 1 }
 0x50b   :  { %1496 = vsyncpa [#allocation4], 1 }

</bundles_post_ra>
